<compile_context>
chip_gen: v7x
topology: tpu7x:2x2x1
jax: 0.10.0
libtpu: 0.0.40
codegen_flags: <defaults>
</compile_context>

<pallas_src>
import functools
import math

import jax
import jax.numpy as jnp
from jax.experimental import pallas as pl
from jax.experimental.pallas import tpu as pltpu

HIDDEN = 512


def _layernorm_kernel(x_ref, g_ref, b_ref, o_ref, *, eps):
    # x_ref: (tile_rows, HIDDEN) ; g_ref/b_ref: (1, HIDDEN)
    x = x_ref[...].astype(jnp.float32)
    n = x.shape[-1]

    # Two-pass statistics on the VMEM-resident tile: numerically safe, and
    # `diff` is needed for the output anyway, so no extra full-tile temporary
    # vs. the one-pass (sum, sumsq) formulation.
    mean = jnp.sum(x, axis=-1, keepdims=True) * (1.0 / n)      # (tile_rows, 1)
    diff = x - mean
    # unbiased variance (ddof=1), matching torch.std default
    var = jnp.sum(diff * diff, axis=-1, keepdims=True) * (1.0 / (n - 1))
    std = jnp.sqrt(var)

    # Per-row reciprocal on the (tile_rows, 1) column, then broadcast multiply
    # — avoids tile_rows*HIDDEN VPU divides.  approx=False keeps the 1e-5
    # reference tolerance safe.
    inv = pl.reciprocal(std + eps, approx=False)

    gamma = g_ref[...].astype(jnp.float32)
    beta = b_ref[...].astype(jnp.float32)
    y = diff * inv * gamma + beta
    o_ref[...] = y.astype(o_ref.dtype)


def _device_kind():
    try:
        return jax.devices()[0].device_kind.lower()
    except Exception:  # pragma: no cover - defensive
        return ""


def _is_v7x(kind):
    return "v7" in kind


def _round_up(v, m):
    return ((v + m - 1) // m) * m


def layer_normalization(x, gamma, beta, *, eps=1e-5, tile_rows=None):
    orig_shape = x.shape
    assert orig_shape[-1] == HIDDEN, "last dim must be 512 (module hidden size)"
    rows = math.prod(orig_shape[:-1]) if orig_shape[:-1] else 1
    x2 = x.reshape(rows, HIDDEN)

    kind = _device_kind()
    v7x = _is_v7x(kind)

    # Default: 1024-row blocks = 2 MiB f32 — big enough to sit at ~85% of the
    # HBM roofline on every generation (vmem limit raised below).
    if tile_rows is None:
        tile_rows = 1024

    if rows <= 8:
        # full-dim block is allowed by the (8,128) rule
        tile_rows = rows
    else:
        # Don't let the block exceed the (8-rounded) row count; otherwise keep
        # the big tile — per-step overhead amortization beats extra grid steps
        # on single-TC chips (v5e/v6e).
        tile_rows = min(tile_rows, _round_up(rows, 8))
        tile_rows = max(8, (tile_rows // 8) * 8)
        if v7x and rows > 16:
            # Guarantee >=2 grid steps so both TensorCores get work; only
            # shrink below the default when rows force it.
            half = max(8, ((rows // 2) // 8) * 8)
            tile_rows = min(tile_rows, half)

    gamma2 = gamma.reshape(1, HIDDEN)
    beta2 = beta.reshape(1, HIDDEN)

    # No pad / slice: cdiv grid, Pallas masks the partial last block.  Safe
    # because the reduction is strictly per-row and partial-block stores are
    # masked; garbage rows never contaminate valid rows.
    grid = (pl.cdiv(rows, tile_rows),)

    dtype_size = jnp.dtype(x.dtype).itemsize
    cost = pl.CostEstimate(
        flops=8 * rows * HIDDEN,
        transcendentals=2 * rows,  # sqrt + reciprocal per row
        bytes_accessed=2 * rows * HIDDEN * dtype_size + 2 * HIDDEN * 4,
    )

    # Right-sized scoped-VMEM limit: footprint is ~2x2 MiB in-buffers +
    # 2x2 MiB out-buffers + a few MiB of f32 temporaries (~14-16 MiB).
    # v7x has only 64 MiB physical VMEM -> 32 MiB; v5e/v6e have 128 MiB -> 48.
    vmem_limit = (32 if v7x else 48) * 1024 * 1024

    out = pl.pallas_call(
        functools.partial(_layernorm_kernel, eps=eps),
        out_shape=jax.ShapeDtypeStruct((rows, HIDDEN), x.dtype),
        grid_spec=pltpu.PrefetchScalarGridSpec(
            num_scalar_prefetch=0,
            grid=grid,
            in_specs=[
                pl.BlockSpec((tile_rows, HIDDEN), lambda i: (i, 0)),
                pl.BlockSpec((1, HIDDEN), lambda i: (0, 0)),
                pl.BlockSpec((1, HIDDEN), lambda i: (0, 0)),
            ],
            out_specs=pl.BlockSpec((tile_rows, HIDDEN), lambda i: (i, 0)),
        ),
        compiler_params=pltpu.CompilerParams(
            dimension_semantics=("parallel",),
            vmem_limit_bytes=vmem_limit,
        ),
        cost_estimate=cost,
    )(x2, gamma2, beta2)

    return out.reshape(orig_shape)


if __name__ == "__main__":
    key = jax.random.PRNGKey(0)
    batch, seq = 2, 8
    x = jax.random.normal(key, (batch, seq, HIDDEN), dtype=jnp.float32)

    # deterministic parameter init, same as the module: ones / zeros
    gamma = jnp.ones((HIDDEN,), dtype=jnp.float32)
    beta = jnp.zeros((HIDDEN,), dtype=jnp.float32)

    out = layer_normalization(x, gamma, beta, eps=1e-5)
    out = jax.block_until_ready(out)

    # reference check in plain JAX (same unbiased-std, eps-outside-sqrt
    # semantics as the PyTorch module's forward)
    mean = jnp.mean(x, axis=-1, keepdims=True)
    std = jnp.std(x, axis=-1, keepdims=True, ddof=1)
    ref = gamma * (x - mean) / (std + 1e-5) + beta
    assert jnp.allclose(out, ref, atol=1e-5, rtol=1e-5), "mismatch vs reference"

    print("KERNEL_OK")
</pallas_src>

<mosaic_0001>
module attributes {stable_mosaic.version = 11 : i64} {
  func.func @_layernorm_kernel(%arg0: i32, %arg1: memref<16x512xf32, #tpu.memory_space<vmem>>, %arg2: memref<1x512xf32, #tpu.memory_space<vmem>>, %arg3: memref<1x512xf32, #tpu.memory_space<vmem>>, %arg4: memref<16x512xf32, #tpu.memory_space<vmem>>) attributes {dimension_semantics = [#tpu.dimension_semantics<parallel>], iteration_bounds = array<i64: 1>, scalar_prefetch = 0 : i64, scratch_operands = 0 : i64, tpu.core_type = #tpu.core_type<tc>, window_params = [{transform_indices = @transform_0, window_bounds = array<i64: 16, 512>}, {pipeline_mode = #tpu.pipeline_mode<synchronous>, transform_indices = @transform_1, window_bounds = array<i64: 1, 512>}, {pipeline_mode = #tpu.pipeline_mode<synchronous>, transform_indices = @transform_2, window_bounds = array<i64: 1, 512>}, {transform_indices = @transform_3, window_bounds = array<i64: 16, 512>}]} {
    %c0 = arith.constant 0 : index
    %c0_0 = arith.constant 0 : index
    %0 = vector.load %arg1[%c0, %c0_0] : memref<16x512xf32, #tpu.memory_space<vmem>>, vector<16x512xf32>
    %cst = arith.constant dense<0.000000e+00> : vector<16xf32>
    %1 = vector.multi_reduction <add>, %0, %cst [1] : vector<16x512xf32> to vector<16xf32>
    %2 = vector.shape_cast %1 : vector<16xf32> to vector<16x1xf32>
    %cst_1 = arith.constant 0.001953125 : f32
    %3 = vector.broadcast %cst_1 : f32 to vector<16x1xf32>
    %4 = arith.mulf %2, %3 : vector<16x1xf32>
    %5 = vector.broadcast %4 : vector<16x1xf32> to vector<16x512xf32>
    %6 = arith.subf %0, %5 : vector<16x512xf32>
    %7 = arith.mulf %6, %6 : vector<16x512xf32>
    %cst_2 = arith.constant dense<0.000000e+00> : vector<16xf32>
    %8 = vector.multi_reduction <add>, %7, %cst_2 [1] : vector<16x512xf32> to vector<16xf32>
    %9 = vector.shape_cast %8 : vector<16xf32> to vector<16x1xf32>
    %cst_3 = arith.constant 0.00195694715 : f32
    %10 = vector.broadcast %cst_3 : f32 to vector<16x1xf32>
    %11 = arith.mulf %9, %10 : vector<16x1xf32>
    %12 = math.sqrt %11 : vector<16x1xf32>
    %cst_4 = arith.constant 9.99999974E-6 : f32
    %13 = vector.broadcast %cst_4 : f32 to vector<16x1xf32>
    %14 = arith.addf %12, %13 : vector<16x1xf32>
    %15 = tpu.reciprocal %14 : vector<16x1xf32> -> vector<16x1xf32>
    %c0_5 = arith.constant 0 : index
    %c0_6 = arith.constant 0 : index
    %16 = vector.load %arg2[%c0_5, %c0_6] : memref<1x512xf32, #tpu.memory_space<vmem>>, vector<1x512xf32>
    %c0_7 = arith.constant 0 : index
    %c0_8 = arith.constant 0 : index
    %17 = vector.load %arg3[%c0_7, %c0_8] : memref<1x512xf32, #tpu.memory_space<vmem>>, vector<1x512xf32>
    %18 = vector.broadcast %15 : vector<16x1xf32> to vector<16x512xf32>
    %19 = arith.mulf %6, %18 : vector<16x512xf32>
    %20 = vector.broadcast %16 : vector<1x512xf32> to vector<16x512xf32>
    %21 = arith.mulf %19, %20 : vector<16x512xf32>
    %22 = vector.broadcast %17 : vector<1x512xf32> to vector<16x512xf32>
    %23 = arith.addf %21, %22 : vector<16x512xf32>
    %c0_9 = arith.constant 0 : index
    %c0_10 = arith.constant 0 : index
    %24 = vector.load %arg4[%c0_9, %c0_10] : memref<16x512xf32, #tpu.memory_space<vmem>>, vector<16x512xf32>
    tpu.vector_store %arg4[%c0_9, %c0_10], %23 {strides = array<i32>} : memref<16x512xf32, #tpu.memory_space<vmem>>, vector<16x512xf32>,
    return
  }
  func.func @transform_0(%arg0: i32) -> (i32, i32) {
    %c0_i32 = arith.constant 0 : i32
    %c0_i32_0 = arith.constant 0 : i32
    return %arg0, %c0_i32 : i32, i32
  }
  func.func @transform_1(%arg0: i32) -> (i32, i32) {
    %c0_i32 = arith.constant 0 : i32
    %c0_i32_0 = arith.constant 0 : i32
    %c0_i32_1 = arith.constant 0 : i32
    return %c0_i32, %c0_i32_0 : i32, i32
  }
  func.func @transform_2(%arg0: i32) -> (i32, i32) {
    %c0_i32 = arith.constant 0 : i32
    %c0_i32_0 = arith.constant 0 : i32
    %c0_i32_1 = arith.constant 0 : i32
    return %c0_i32, %c0_i32_0 : i32, i32
  }
  func.func @transform_3(%arg0: i32) -> (i32, i32) {
    %c0_i32 = arith.constant 0 : i32
    %c0_i32_0 = arith.constant 0 : i32
    return %arg0, %c0_i32 : i32, i32
  }
}

</mosaic_0001>

<bundles_post_ra>
// kernel: tpu_custom_call.1
= control target key start
LH: loop header
LB: loop body
LE: loop exit
PB: predicated region body
PF: predicated region fallthrough
CT: control target
= control target key end

     0   :  { %8 = vsyncpa [#allocation3], 0  ;;  %s391_s0 = inlined_call_operand.hbm [shape: f32[16,512], index: 0, kind: input, shape index: {}]   ;;  %s392_s1 = inlined_call_operand.hbm [shape: f32[1,512], index: 1, kind: input, shape index: {}]   ;;  %s393_s2 = inlined_call_operand.vmem [shape: f32[1,512], index: 2, kind: input, shape index: {}]   ;;  %s394_s3 = inlined_call_operand.hbm [shape: f32[16,512], index: 3, kind: output, shape index: {}]  }
   0x1   :  { %9 = vsyncpa [#allocation6], 0 }
   0x2   :  { %10 = vsyncpa [#allocation4], 0  ;;  %s286_s12 = smov [#allocation2]   ;;  %s214_s16 = scalar_lea.hbm %s391_s0, 1024 }
   0x3   :  { %s16_s13 = sshll.u32 %s286_s12, 4  ;;  %p215_p0 = scmp.ne.s32.totalorder %s391_s0, %s214_s16  ;;  %s17_s13 = int_to_ptr.vmem [resolvable:$true] %s16_s13 }
   0x4   :  { %p218_p1 = scmp.lt.u32.totalorder %s214_s16, %s391_s0 }
   0x6   :  { %p220_p2 = pnand %p218_p1, %p215_p0 }
   0x8   :  { %223 = shalt.err (!%p220_p2)
}
   0x9   :  { %s224_s21 = scalar_lea.vmem %s17_s13, 1024  ;;  %p229_p4 = scmp.lt.s32.totalorder %s17_s13, %s17_s13 }
   0xa   :  { %p225_p3 = scmp.ne.s32.totalorder %s17_s13, %s224_s21  ;;  %p230_p5 = scmp.lt.s32.totalorder %s224_s21, %s224_s21 }
   0xc   :  { %p231_p6 = por %p230_p5, %p229_p4 }
   0xe   :  { %p232_p7 = pnand %p231_p6, %p225_p3 }
  0x10   :  { %235 = shalt.err (!%p232_p7)
}
  0x11   :  { %s287_s22 = smov 512   ;;  %s288_s23 = smov 32  }
  0x12   :  { %22 = dma.hbm_to_vmem [thread:$0]  %s391_s0, 1024, %s17_s13, [#allocation3], %s287_s22, %s287_s22, %s288_s23  }
  0x13   :  { %s289_s26 = smov [#allocation5]   ;;  %s236_s30 = scalar_lea.hbm %s392_s1, 64 }
  0x14   :  { %s29_s27 = sshll.u32 %s289_s26, 4  ;;  %p237_p8 = scmp.ne.s32.totalorder %s392_s1, %s236_s30  ;;  %s30_s27 = int_to_ptr.vmem [resolvable:$true] %s29_s27 }
  0x15   :  { %p240_p9 = scmp.lt.u32.totalorder %s236_s30, %s392_s1 }
  0x17   :  { %p242_p10 = pnand %p240_p9, %p237_p8 }
  0x19   :  { %245 = shalt.err (!%p242_p10)
}
  0x1a   :  { %s246_s8 = scalar_lea.vmem %s30_s27, 64  ;;  %p251_p12 = scmp.lt.s32.totalorder %s30_s27, %s30_s27 }
  0x1b   :  { %p247_p11 = scmp.ne.s32.totalorder %s30_s27, %s246_s8  ;;  %p252_p13 = scmp.lt.s32.totalorder %s246_s8, %s246_s8 }
  0x1d   :  { %p253_p0 = por %p252_p13, %p251_p12 }
  0x1f   :  { %p254_p1 = pnand %p253_p0, %p247_p11 }
  0x21   :  { %257 = shalt.err (!%p254_p1)
}
  0x22   :  { %32 = dma.hbm_to_vmem [thread:$0]  %s392_s1, 64, %s30_s27, [#allocation6]  }
  0x23   :  { %280 = dma.done.wait [#allocation3], 1024  }
  0x24   :  { %281 = vsyncadd [#allocation3], 4294966272 }
  0x25   :  { %282 = dma.done.wait [#allocation6], 64  }
  0x26   :  { %283 = vsyncadd [#allocation6], 4294967232  ;;  %v41_v0 = vld [vmem:[#allocation2] sm:$0xff]  ;;  %v42_v1 = vld [vmem:[#allocation2 + $0x8] sm:$0xff]  ;;  %v118_v50 = vlaneseq }
  0x27   :  { %v43_v2 = vld [vmem:[#allocation2 + $0x10] sm:$0xff]  ;;  %v49_v3 = vadd.f32 %v42_v1, %v41_v0  ;;  %v45_v4 = vld [vmem:[#allocation2 + $0x20] sm:$0xff]  ;;  %v46_v5 = vld [vmem:[#allocation2 + $0x28] sm:$0xff] }
  0x28   :  { %v44_v6 = vld [vmem:[#allocation2 + $0x18] sm:$0xff]  ;;  %v47_v7 = vld [vmem:[#allocation2 + $0x30] sm:$0xff]  ;;  %v54_v8 = vadd.f32 %v46_v5, %v45_v4  ;;  %v119_v56 = vshrl.u32 %v118_v50, 7  ;;  %v107_v62 = vld [vmem:[#allocation5] sm:$0xf] }
  0x29   :  { %v50_v9 = vadd.f32 %v49_v3, %v43_v2  ;;  %v48_v10 = vld [vmem:[#allocation2 + $0x38] sm:$0xff]  ;;  %v108_v63 = vld [vmem:[%s393_s2] sm:$0xf]  ;;  %s290_s2 = smov [#allocation7]  }
  0x2a   :  { %v55_v11 = vadd.f32 %v54_v8, %v47_v7  ;;  %v120_v58 = vsub.s32 0, %v119_v56  ;;  %v124_v59 = vsub.s32 1, %v119_v56  ;;  %v128_v60 = vsub.s32 2, %v119_v56  ;;  %s188_s11 = sshll.u32 %s290_s2, 4  ;;  %s189_s11 = int_to_ptr.vmem [resolvable:$true] %s188_s11 }
  0x2b   :  { %v51_v12 = vadd.f32 %v50_v9, %v44_v6  ;;  %v132_v61 = vsub.s32 3, %v119_v56  ;;  %s258_s12 = scalar_lea.vmem %s189_s11, 1024  ;;  %p263_p3 = scmp.lt.s32.totalorder %s189_s11, %s189_s11 }
  0x2c   :  { %v56_v13 = vadd.f32 %v55_v11, %v48_v10  ;;  %v150_v9 = vrot.slane %v108_v63, %v120_v58  ;;  %v158_v11 = vrot.slane %v108_v63, %v128_v60  ;;  %p259_p2 = scmp.ne.s32.totalorder %s189_s11, %s258_s12  ;;  %p264_p4 = scmp.lt.s32.totalorder %s258_s12, %s258_s12 }
  0x2d   :  { %52 = vadd.xlane.f32.xlu0 %v51_v12  ;;  %v133_v3 = vrot.slane %v107_v62, %v132_v61  ;;  %v162_v12 = vrot.slane %v108_v63, %v132_v61 }
  0x2e   :  { %p265_p5 = por %p264_p4, %p263_p3 }
  0x30   :  { %p266_p6 = pnand %p265_p5, %p259_p2 }
  0x31   :  { %57 = vadd.xlane.f32.xlu0 %v56_v13 }
  0xba   :  { %v53_v14 = vpop.xlane.xlu0 %52 }
  0xbb   :  { %v59_v15 = vmul.f32 0.001953125, %v53_v14 }
  0xbd   :  { %v338_v16 = vsub.f32 %v41_v0, %v59_v15  ;;  %v340_v17 = vsub.f32 %v42_v1, %v59_v15  ;;  %v342_v18 = vsub.f32 %v43_v2, %v59_v15  ;;  %v64_v20 = vsub.f32 %v44_v6, %v59_v15 }
  0xbe   :  { %v58_v19 = vpop.xlane.xlu0 %57  ;;  %v121_v0 = vrot.slane %v107_v62, %v120_v58  ;;  %v125_v1 = vrot.slane %v107_v62, %v124_v59  ;;  %v129_v2 = vrot.slane %v107_v62, %v128_v60 }
  0xbf   :  { %v60_v21 = vmul.f32 0.001953125, %v58_v19  ;;  %v69_v22 = vmul.f32 %v338_v16, %v338_v16  ;;  %v70_v23 = vmul.f32 %v340_v17, %v340_v17  ;;  %v71_v24 = vmul.f32 %v342_v18, %v342_v18 }
  0xc0   :  { %v72_v29 = vmul.f32 %v64_v20, %v64_v20 }
  0xc1   :  { %v350_v25 = vsub.f32 %v45_v4, %v60_v21  ;;  %v352_v26 = vsub.f32 %v46_v5, %v60_v21  ;;  %v77_v27 = vadd.f32 %v70_v23, %v69_v22  ;;  %v354_v28 = vsub.f32 %v47_v7, %v60_v21 }
  0xc2   :  { %v356_v31 = vsub.f32 %v48_v10, %v60_v21  ;;  %v154_v10 = vrot.slane %v108_v63, %v124_v59 }
  0xc3   :  { %v78_v30 = vadd.f32 %v77_v27, %v71_v24  ;;  %v73_v32 = vmul.f32 %v350_v25, %v350_v25  ;;  %v74_v33 = vmul.f32 %v352_v26, %v352_v26  ;;  %v75_v35 = vmul.f32 %v354_v28, %v354_v28 }
  0xc4   :  { %v76_v37 = vmul.f32 %v356_v31, %v356_v31 }
  0xc5   :  { %v79_v34 = vadd.f32 %v78_v30, %v72_v29  ;;  %v82_v36 = vadd.f32 %v74_v33, %v73_v32 }
  0xc7   :  { %80 = vadd.xlane.f32.xlu1 %v79_v34  ;;  %v83_v38 = vadd.f32 %v82_v36, %v75_v35 }
  0xc9   :  { %v84_v39 = vadd.f32 %v83_v38, %v76_v37 }
  0xcb   :  { %85 = vadd.xlane.f32.xlu1 %v84_v39 }
 0x154   :  { %v81_v40 = vpop.xlane.xlu1 %80 }
 0x155   :  { %v87_v41 = vmul.f32 0.0019569471, %v81_v40 }
 0x157   :  { %206 = vrsqrt.f32 %v87_v41  ;;  %vm91_vm0 = vcmp.eq.f32.partialorder %v87_v41, inf  ;;  %v94_v46 = vand.u32 2147483648, %v87_v41  ;;  %vm93_vm1 = vcmp.eq.f32.partialorder %v87_v41, 0.0 }
 0x158   :  { %v86_v42 = vpop.xlane.xlu1 %85 }
 0x159   :  { %v88_v43 = vmul.f32 0.0019569471, %v86_v42 }
 0x15b   :  { %208 = vrsqrt.f32 %v88_v43  ;;  %vm98_vm2 = vcmp.eq.f32.partialorder %v88_v43, inf  ;;  %v101_v53 = vand.u32 2147483648, %v88_v43  ;;  %vm100_vm3 = vcmp.eq.f32.partialorder %v88_v43, 0.0 }
 0x161   :  { %v207_v44 = vpop.eup %206 }
 0x162   :  { %v90_v45 = vmul.f32 %v207_v44, %v87_v41 }
 0x164   :  { %v92_v47 = vsel %vm91_vm0, %v87_v41, %v90_v45 }
 0x165   :  { %v209_v48 = vpop.eup %208  ;;  %v95_v49 = vsel %vm93_vm1, %v94_v46, %v92_v47 }
 0x166   :  { %v103_v51 = vadd.f32 1e-05, %v95_v49  ;;  %v97_v52 = vmul.f32 %v209_v48, %v88_v43 }
 0x168   :  { %210 = vrcp.f32 %v103_v51  ;;  %v99_v54 = vsel %vm98_vm2, %v88_v43, %v97_v52 }
 0x169   :  { %v102_v55 = vsel %vm100_vm3, %v101_v53, %v99_v54 }
 0x16a   :  { %v104_v57 = vadd.f32 1e-05, %v102_v55 }
 0x16c   :  { %212 = vrcp.f32 %v104_v57 }
 0x172   :  { %v211_v4 = vpop.eup %210 }
 0x173   :  { %v109_v5 = vmul.f32 %v211_v4, %v338_v16  ;;  %v110_v6 = vmul.f32 %v211_v4, %v340_v17  ;;  %v111_v7 = vmul.f32 %v211_v4, %v342_v18  ;;  %v112_v8 = vmul.f32 %v211_v4, %v64_v20 }
 0x175   :  { %v138_v13 = vmul.f32 %v121_v0, %v109_v5  ;;  %v139_v14 = vmul.f32 %v125_v1, %v110_v6  ;;  %v140_v15 = vmul.f32 %v129_v2, %v111_v7  ;;  %v141_v19 = vmul.f32 %v133_v3, %v112_v8 }
 0x176   :  { %v213_v21 = vpop.eup %212 }
 0x177   :  { %v113_v22 = vmul.f32 %v213_v21, %v350_v25  ;;  %v114_v23 = vmul.f32 %v213_v21, %v352_v26  ;;  %v115_v16 = vmul.f32 %v213_v21, %v354_v28  ;;  %v116_v17 = vmul.f32 %v213_v21, %v356_v31 }
 0x178   :  { %v167_v24 = vadd.f32 %v150_v9, %v138_v13  ;;  %v168_v18 = vadd.f32 %v154_v10, %v139_v14  ;;  %v169_v20 = vadd.f32 %v158_v11, %v140_v15  ;;  %v170_v27 = vadd.f32 %v162_v12, %v141_v19 }
 0x179   :  { %v142_v29 = vmul.f32 %v121_v0, %v113_v22  ;;  %v143_v30 = vmul.f32 %v125_v1, %v114_v23  ;;  %v144_v32 = vmul.f32 %v129_v2, %v115_v16  ;;  %v145_v33 = vmul.f32 %v133_v3, %v116_v17 }
 0x17a   :  { %175 = vst [vmem:[#allocation7] sm:$0xff] %v167_v24  ;;  %176 = vst [vmem:[#allocation7 + $0x8] sm:$0xff] %v168_v18 }
 0x17b   :  { %177 = vst [vmem:[#allocation7 + $0x10] sm:$0xff] %v169_v20  ;;  %178 = vst [vmem:[#allocation7 + $0x18] sm:$0xff] %v170_v27  ;;  %v171_v25 = vadd.f32 %v150_v9, %v142_v29  ;;  %v172_v26 = vadd.f32 %v154_v10, %v143_v30  ;;  %v173_v34 = vadd.f32 %v158_v11, %v144_v32 }
 0x17c   :  { %v174_v28 = vadd.f32 %v162_v12, %v145_v33 }
 0x17d   :  { %179 = vst [vmem:[#allocation7 + $0x20] sm:$0xff] %v171_v25  ;;  %180 = vst [vmem:[#allocation7 + $0x28] sm:$0xff] %v172_v26 }
 0x17e   :  { %181 = vst [vmem:[#allocation7 + $0x30] sm:$0xff] %v173_v34  ;;  %182 = vst [vmem:[#allocation7 + $0x38] sm:$0xff] %v174_v28 }
 0x17f   :  { %269 = shalt.err (!%p266_p6)
}
 0x180   :  { %s270_s15 = scalar_lea.hbm %s394_s3, 1024 }
 0x181   :  { %p271_p7 = scmp.ne.s32.totalorder %s394_s3, %s270_s15  ;;  %p274_p8 = scmp.lt.u32.totalorder %s270_s15, %s394_s3 }
 0x183   :  { %p276_p9 = pnand %p274_p8, %p271_p7 }
 0x185   :  { %279 = shalt.err (!%p276_p9)
}
 0x186   :  { %194 = dma.vmem_to_hbm [thread:$0]  %s189_s11, 1024, %s394_s3, [#allocation4], %s287_s22, %s287_s22, %s288_s23  }
 0x187   :  { %284 = dma.done.wait [#allocation4], 1024  }
 0x188   :  { %285 = vsyncadd [#allocation4], 4294966272 }
 0x189   :  { %198 = vsyncpa [#allocation3], 1 }
 0x18a   :  { %199 = vsyncpa [#allocation6], 1 }
 0x18b   :  { %200 = vsyncpa [#allocation4], 1 }

</bundles_post_ra>
